<compile_context>
chip_gen: v7x
topology: tpu7x:2x2x1
jax: 0.10.0
libtpu: 0.0.40
codegen_flags: <defaults>
</compile_context>

<pallas_src>
import functools

import jax
import jax.numpy as jnp
from jax.experimental import pallas as pl
from jax.experimental.pallas import tpu as pltpu

# Minimum rows per TensorCore before we force a >=2-step grid (v7x megacore).
_MIN_SPLIT_ROWS = 128


def _round_up(n, m):
    return ((n + m - 1) // m) * m


def _kernel(x_ref, w_att_ref, w_enc_ref, b_enc_ref, w_rev_ref, out_ref, attn_ref):
    x = x_ref[...]                                                       # [blk, T]

    # Attention: Linear (no bias) + softmax over the last axis.
    logits = jnp.dot(x, w_att_ref[...],
                     preferred_element_type=jnp.float32)                 # [blk, S]
    m = jnp.max(logits, axis=1, keepdims=True)
    e = jnp.exp(logits - m)
    probs = e / jnp.sum(e, axis=1, keepdims=True)    # exact div: kernel is DMA-bound

    # attention_prob = x.detach().clone()  -> second output (a copy).
    attn_ref[...] = probs.astype(attn_ref.dtype)

    # source_encoder: Linear(S, S) + bias, ReLU.
    h = jnp.dot(probs.astype(w_enc_ref.dtype), w_enc_ref[...],
                preferred_element_type=jnp.float32)                      # [blk, S]
    h = jnp.maximum(h + b_enc_ref[...].astype(jnp.float32), 0.0)

    # ReverseAttention: Linear (no bias), S -> T.
    out = jnp.dot(h.astype(w_rev_ref.dtype), w_rev_ref[...],
                  preferred_element_type=jnp.float32)                    # [blk, T]
    out_ref[...] = out.astype(out_ref.dtype)


def prepare_params(w_att, w_enc, b_enc, w_rev, dtype=jnp.float32):
    """One-time pack: transpose PyTorch [out, in] weights to [in, out].

    No lane padding: blocks equal to the full (small) feature dims are legal and
    keep HBM traffic minimal.  `dtype=jnp.bfloat16` enables bf16 streaming on
    v6e/v7x (accumulation stays f32 in-kernel).
    """
    S, T = w_att.shape
    assert w_enc.shape == (S, S) and b_enc.shape == (S,) and w_rev.shape == (T, S)
    return (jnp.asarray(w_att.T, dtype),            # [T, S]
            jnp.asarray(w_enc.T, dtype),            # [S, S]
            jnp.asarray(b_enc.reshape(1, S), dtype),  # [1, S]
            jnp.asarray(w_rev.T, dtype))            # [S, T]


@functools.partial(jax.jit, static_argnames=("row_block",))
def cross_graph_attention(x, params, *, row_block=512):
    """x: [B, T].  params: output of prepare_params().

    Returns (out [B, T] f32, attention_prob [B, S] f32).
    """
    w_att_t, w_enc_t, b_enc_2d, w_rev_t = params
    B, T = x.shape
    S = w_att_t.shape[1]

    # Balanced row tiling.  Ensure >=2 grid steps when B is large so both v7x
    # TensorCores are used (the row axis is marked "parallel").
    num_tiles = pl.cdiv(B, row_block)
    if B >= 2 * _MIN_SPLIT_ROWS:
        num_tiles = max(num_tiles, 2)
    blk = _round_up(pl.cdiv(B, num_tiles), 8)
    Bp = num_tiles * blk

    x_p = x.astype(w_att_t.dtype)
    if Bp != B:
        x_p = jnp.pad(x_p, ((0, Bp - B), (0, 0)))

    out_p, attn_p = pl.pallas_call(
        _kernel,
        grid=(num_tiles,),
        out_shape=(jax.ShapeDtypeStruct((Bp, T), jnp.float32),
                   jax.ShapeDtypeStruct((Bp, S), jnp.float32)),
        in_specs=[
            # Streamed per row-tile:
            pl.BlockSpec((blk, T), lambda i: (i, 0)),
            # Weights: constant block index -> stay VMEM-resident across steps.
            # (For very large T/S, re-budget with bf16 / Buffered(1) / K-tiling.)
            pl.BlockSpec((T, S), lambda i: (0, 0)),
            pl.BlockSpec((S, S), lambda i: (0, 0)),
            pl.BlockSpec((1, S), lambda i: (0, 0)),
            pl.BlockSpec((S, T), lambda i: (0, 0)),
        ],
        out_specs=(
            pl.BlockSpec((blk, T), lambda i: (i, 0)),
            pl.BlockSpec((blk, S), lambda i: (i, 0)),
        ),
        compiler_params=pltpu.CompilerParams(
            dimension_semantics=("parallel",),
        ),
    )(x_p, w_att_t, w_enc_t, b_enc_2d, w_rev_t)

    if Bp != B:
        out_p = out_p[:B]
        attn_p = attn_p[:B]
    return out_p, attn_p


def _reference(x, w_att, w_enc, b_enc, w_rev):
    logits = x @ w_att.T
    logits = logits - jnp.max(logits, axis=1, keepdims=True)
    e = jnp.exp(logits)
    probs = e / jnp.sum(e, axis=1, keepdims=True)
    h = jnp.maximum(probs @ w_enc.T + b_enc, 0.0)
    out = h @ w_rev.T
    return out, probs


if __name__ == "__main__":
    B = 300                  # rows fed to the module (exercises 2 balanced tiles)
    T = 32                   # target_num_nodes (input feature dim)
    S = 16                   # source_num_nodes

    key = jax.random.PRNGKey(0)
    kx, k1, k2, k3, k4 = jax.random.split(key, 5)

    x = jax.random.normal(kx, (B, T), dtype=jnp.float32)

    # Deterministic parameter init (PyTorch [out, in] layout).
    w_att = jax.random.normal(k1, (S, T), dtype=jnp.float32) * 0.1   # Attention.linear
    w_enc = jax.random.normal(k2, (S, S), dtype=jnp.float32) * 0.1   # source_encoder linear
    b_enc = jax.random.normal(k3, (S,), dtype=jnp.float32) * 0.1
    w_rev = jax.random.normal(k4, (T, S), dtype=jnp.float32) * 0.1   # ReverseAttention.linear

    params = prepare_params(w_att, w_enc, b_enc, w_rev)   # one-time pack (f32)

    out, attn = cross_graph_attention(x, params)
    jax.block_until_ready((out, attn))

    ref_out, ref_attn = _reference(x, w_att, w_enc, b_enc, w_rev)
    assert out.shape == (B, T) and attn.shape == (B, S)
    assert jnp.allclose(out, ref_out, atol=1e-4, rtol=1e-4)
    assert jnp.allclose(attn, ref_attn, atol=1e-4, rtol=1e-4)
    assert jnp.allclose(jnp.sum(attn, axis=1), 1.0, atol=1e-5)

    print("KERNEL_OK")
</pallas_src>

<mosaic_0001>
module attributes {stable_mosaic.version = 11 : i64} {
  func.func @_kernel(%arg0: i32, %arg1: memref<152x32xf32, #tpu.memory_space<vmem>>, %arg2: memref<32x16xf32, #tpu.memory_space<vmem>>, %arg3: memref<16x16xf32, #tpu.memory_space<vmem>>, %arg4: memref<1x16xf32, #tpu.memory_space<vmem>>, %arg5: memref<16x32xf32, #tpu.memory_space<vmem>>, %arg6: memref<152x32xf32, #tpu.memory_space<vmem>>, %arg7: memref<152x16xf32, #tpu.memory_space<vmem>>) attributes {dimension_semantics = [#tpu.dimension_semantics<parallel>], iteration_bounds = array<i64: 2>, scalar_prefetch = 0 : i64, scratch_operands = 0 : i64, tpu.core_type = #tpu.core_type<tc>, window_params = [{transform_indices = @transform_0, window_bounds = array<i64: 152, 32>}, {pipeline_mode = #tpu.pipeline_mode<synchronous>, transform_indices = @transform_1, window_bounds = array<i64: 32, 16>}, {pipeline_mode = #tpu.pipeline_mode<synchronous>, transform_indices = @transform_2, window_bounds = array<i64: 16, 16>}, {pipeline_mode = #tpu.pipeline_mode<synchronous>, transform_indices = @transform_3, window_bounds = array<i64: 1, 16>}, {pipeline_mode = #tpu.pipeline_mode<synchronous>, transform_indices = @transform_4, window_bounds = array<i64: 16, 32>}, {transform_indices = @transform_5, window_bounds = array<i64: 152, 32>}, {transform_indices = @transform_6, window_bounds = array<i64: 152, 16>}]} {
    %c0 = arith.constant 0 : index
    %c0_0 = arith.constant 0 : index
    %0 = vector.load %arg1[%c0, %c0_0] : memref<152x32xf32, #tpu.memory_space<vmem>>, vector<152x32xf32>
    %c0_1 = arith.constant 0 : index
    %c0_2 = arith.constant 0 : index
    %1 = vector.load %arg2[%c0_1, %c0_2] : memref<32x16xf32, #tpu.memory_space<vmem>>, vector<32x16xf32>
    %cst = arith.constant dense<0.000000e+00> : vector<152x16xf32>
    %2 = tpu.matmul %0, %1, %cst {dimension_numbers = #tpu.dot_dimension_numbers<[1], [0], [0], [1], [0, 0, 1, 1], [], []>} : vector<152x32xf32>, vector<32x16xf32>, vector<152x16xf32> -> vector<152x16xf32>
    %cst_3 = arith.constant dense<0xFF800000> : vector<152xf32>
    %3 = vector.multi_reduction <maximumf>, %2, %cst_3 [1] : vector<152x16xf32> to vector<152xf32>
    %4 = vector.shape_cast %3 : vector<152xf32> to vector<152x1xf32>
    %5 = vector.broadcast %4 : vector<152x1xf32> to vector<152x16xf32>
    %6 = arith.subf %2, %5 : vector<152x16xf32>
    %7 = math.exp %6 : vector<152x16xf32>
    %cst_4 = arith.constant dense<0.000000e+00> : vector<152xf32>
    %8 = vector.multi_reduction <add>, %7, %cst_4 [1] : vector<152x16xf32> to vector<152xf32>
    %9 = vector.shape_cast %8 : vector<152xf32> to vector<152x1xf32>
    %10 = vector.broadcast %9 : vector<152x1xf32> to vector<152x16xf32>
    %11 = arith.divf %7, %10 : vector<152x16xf32>
    %c0_5 = arith.constant 0 : index
    %c0_6 = arith.constant 0 : index
    %12 = vector.load %arg7[%c0_5, %c0_6] : memref<152x16xf32, #tpu.memory_space<vmem>>, vector<152x16xf32>
    tpu.vector_store %arg7[%c0_5, %c0_6], %11 {strides = array<i32>} : memref<152x16xf32, #tpu.memory_space<vmem>>, vector<152x16xf32>,
    %c0_7 = arith.constant 0 : index
    %c0_8 = arith.constant 0 : index
    %13 = vector.load %arg3[%c0_7, %c0_8] : memref<16x16xf32, #tpu.memory_space<vmem>>, vector<16x16xf32>
    %cst_9 = arith.constant dense<0.000000e+00> : vector<152x16xf32>
    %14 = tpu.matmul %11, %13, %cst_9 {dimension_numbers = #tpu.dot_dimension_numbers<[1], [0], [0], [1], [0, 0, 1, 1], [], []>} : vector<152x16xf32>, vector<16x16xf32>, vector<152x16xf32> -> vector<152x16xf32>
    %c0_10 = arith.constant 0 : index
    %c0_11 = arith.constant 0 : index
    %15 = vector.load %arg4[%c0_10, %c0_11] : memref<1x16xf32, #tpu.memory_space<vmem>>, vector<1x16xf32>
    %16 = vector.broadcast %15 : vector<1x16xf32> to vector<152x16xf32>
    %17 = arith.addf %14, %16 : vector<152x16xf32>
    %cst_12 = arith.constant 0.000000e+00 : f32
    %18 = vector.broadcast %cst_12 : f32 to vector<152x16xf32>
    %19 = arith.maximumf %17, %18 : vector<152x16xf32>
    %c0_13 = arith.constant 0 : index
    %c0_14 = arith.constant 0 : index
    %20 = vector.load %arg5[%c0_13, %c0_14] : memref<16x32xf32, #tpu.memory_space<vmem>>, vector<16x32xf32>
    %cst_15 = arith.constant dense<0.000000e+00> : vector<152x32xf32>
    %21 = tpu.matmul %19, %20, %cst_15 {dimension_numbers = #tpu.dot_dimension_numbers<[1], [0], [0], [1], [0, 0, 1, 1], [], []>} : vector<152x16xf32>, vector<16x32xf32>, vector<152x32xf32> -> vector<152x32xf32>
    %c0_16 = arith.constant 0 : index
    %c0_17 = arith.constant 0 : index
    %22 = vector.load %arg6[%c0_16, %c0_17] : memref<152x32xf32, #tpu.memory_space<vmem>>, vector<152x32xf32>
    tpu.vector_store %arg6[%c0_16, %c0_17], %21 {strides = array<i32>} : memref<152x32xf32, #tpu.memory_space<vmem>>, vector<152x32xf32>,
    return
  }
  func.func @transform_0(%arg0: i32) -> (i32, i32) {
    %c0_i32 = arith.constant 0 : i32
    %c0_i32_0 = arith.constant 0 : i32
    return %arg0, %c0_i32 : i32, i32
  }
  func.func @transform_1(%arg0: i32) -> (i32, i32) {
    %c0_i32 = arith.constant 0 : i32
    %c0_i32_0 = arith.constant 0 : i32
    %c0_i32_1 = arith.constant 0 : i32
    return %c0_i32, %c0_i32_0 : i32, i32
  }
  func.func @transform_2(%arg0: i32) -> (i32, i32) {
    %c0_i32 = arith.constant 0 : i32
    %c0_i32_0 = arith.constant 0 : i32
    %c0_i32_1 = arith.constant 0 : i32
    return %c0_i32, %c0_i32_0 : i32, i32
  }
  func.func @transform_3(%arg0: i32) -> (i32, i32) {
    %c0_i32 = arith.constant 0 : i32
    %c0_i32_0 = arith.constant 0 : i32
    %c0_i32_1 = arith.constant 0 : i32
    return %c0_i32, %c0_i32_0 : i32, i32
  }
  func.func @transform_4(%arg0: i32) -> (i32, i32) {
    %c0_i32 = arith.constant 0 : i32
    %c0_i32_0 = arith.constant 0 : i32
    %c0_i32_1 = arith.constant 0 : i32
    return %c0_i32, %c0_i32_0 : i32, i32
  }
  func.func @transform_5(%arg0: i32) -> (i32, i32) {
    %c0_i32 = arith.constant 0 : i32
    %c0_i32_0 = arith.constant 0 : i32
    return %arg0, %c0_i32 : i32, i32
  }
  func.func @transform_6(%arg0: i32) -> (i32, i32) {
    %c0_i32 = arith.constant 0 : i32
    %c0_i32_0 = arith.constant 0 : i32
    return %arg0, %c0_i32 : i32, i32
  }
}

</mosaic_0001>

<bundles_post_ra>
// kernel: cross_graph_attention.1
= control target key start
LH: loop header
LB: loop body
LE: loop exit
PB: predicated region body
PF: predicated region fallthrough
CT: control target
= control target key end

     0   :  { %s1779_s21 = smov 0   ;;  %s2319_s0 = inlined_call_operand.vmem [shape: f32[304,32], index: 0, kind: input, shape index: {}]   ;;  %s2320_s1 = inlined_call_operand.vmem [shape: f32[32,16], index: 1, kind: input, shape index: {}]   ;;  %s2321_s2 = inlined_call_operand.vmem [shape: f32[16,16], index: 2, kind: input, shape index: {}]   ;;  %s2322_s3 = inlined_call_operand.vmem [shape: f32[1,16], index: 3, kind: input, shape index: {}]   ;;  %s2323_s4 = inlined_call_operand.vmem [shape: f32[16,32], index: 4, kind: input, shape index: {}]   ;;  %s2324_s5 = inlined_call_operand.vmem [shape: f32[304,32], index: 5, kind: output, shape index: {0}]   ;;  %s2325_s6 = inlined_call_operand.vmem [shape: f32[304,16], index: 6, kind: output, shape index: {1}]  }
   0x1 LB: > { %s1312_s22 = sadd.s32 4294967295, %s1739_s21   ;;  %p1316_p0 = scmp.ge.s32.totalorder %s1739_s21, 1  ;;  %s1739_s21 = sphi %s1779_s21, %s17_s21  }
   0x2   : > { %p216_p1 = scmp.lt.s32.totalorder %s1739_s21, 3 }
   0x4   : > { %p217_p2 = pnand %p1316_p0, %p216_p1 }
   0x5   : > { %v288_v0 = vld [vmem:[%s2320_s1] sm:$0xff] (!%p217_p2)  ;;  %v289_v1 = vld [vmem:[%s2320_s1 + $0x8] sm:$0xff] (!%p217_p2)  ;;  %v290_v2 = vld [vmem:[%s2320_s1 + $0x10] sm:$0xff] (!%p217_p2)  ;;  %v1741_v3 = vmov (!%p217_p2), 0.0|0.0   ;;  %vm1742_vm0 = vmmov (!%p217_p2), 0   ;;  %v1743_v6 = vmov (!%p217_p2), 0.0  }
   0x6   : > { %220 = sbr.rel (%p217_p2) target bundleno = 1044 (0x414), region = 40  ;;  %1632 = vmatprep.subr.bf16.mxu0 (!%p217_p2), %v1741_v3  ;;  %v1633_v4 = vpack.c.bf16 (!%p217_p2), %v289_v1, %v288_v0  ;;  %v291_v5 = vld [vmem:[%s2320_s1 + $0x18] sm:$0xff] (!%p217_p2)  ;;  %1453 = vmatprep.mubr.msk.f32.mxu0 (!%p217_p2), %vm1742_vm0, %v1743_v6  ;;  %vm292_vm1 = vcmask (!%p217_p2), 261120   ;;  %vm510_vm2 = vcmask (!%p217_p2), 130048  }
   0x7   : > { %s251_s7 = smul.u32 (!%p217_p2), 19, %s1312_s22  ;;  %1644 = vmatprep.subr.bf16.mxu1 (!%p217_p2), %v1741_v3  ;;  %1541 = vmatprep.mubr.msk.f32.mxu1 (!%p217_p2), %vm1742_vm0, %v1743_v6  ;;  %v1636_v7 = vpack.c.bf16 (!%p217_p2), %v291_v5, %v290_v2 }
   0x8   : > { %1634 = vmatpush3.bf16.msra.mxu0 (!%p217_p2), %v1633_v4 }
   0x9   : > { %p252_p3 = scmp.lt.s32.totalorder (!%p217_p2), %s251_s7, 37  ;;  %1635 = vmatprep.subr.bf16.mxu0 (!%p217_p2), %v1741_v3 }
   0xc   : > { %1637 = vmatpush3.bf16.msra.mxu0 (!%p217_p2), %v1636_v7 }
   0xd   : > { %s2327_s7 = smov (!%p252_p3, %s251_s7), 37  ;;  %1638 = vmatprep.subr.bf16.mxu0 %v1741_v3 }
   0xe   : > { %s1806_s8 = sshll.u32 %s2327_s7, 3 }
   0xf   : > { %s1812_s11 = scalar_lea.vmem %s2319_s0, %s1806_s8  ;;  %s2073_s18 = scalar_lea.vmem %s2325_s6, %s1806_s8 }
  0x10   : > { %v269_v8 = vld [vmem:[%s1812_s11] sm:$0xff]  ;;  %v270_v9 = vld [vmem:[%s1812_s11 + $0x8] sm:$0xff]  ;;  %v271_v10 = vld [vmem:[%s1812_s11 + $0x10] sm:$0xff]  ;;  %s2276_s28 = scalar_lea.vmem %s2324_s5, %s1806_s8 }
  0x11   : > { %1454 = vmatmul.mubr.msk.f32.vlgmr.msra.gmra.mrb[0].mxu0 %vm292_vm1, %v269_v8  ;;  %v272_v11 = vld [vmem:[%s1812_s11 + $0x18] sm:$0xff]  ;;  %v273_v12 = vld [vmem:[%s1812_s11 + $0x20] sm:$0xff]  ;;  %v274_v13 = vld [vmem:[%s1812_s11 + $0x28] sm:$0xff] }
  0x12   : > { %1456 = vmatprep.mubr.msk.f32.mxu0 %vm1742_vm0, %v1743_v6  ;;  %v275_v14 = vld [vmem:[%s1812_s11 + $0x30] sm:$0xff]  ;;  %v276_v15 = vld [vmem:[%s1812_s11 + $0x38] sm:$0xff]  ;;  %v277_v16 = vld [vmem:[%s1812_s11 + $0x40] sm:$0xff] }
  0x13   : > { %v278_v17 = vld [vmem:[%s1812_s11 + $0x48] sm:$0xff]  ;;  %v279_v18 = vld [vmem:[%s1812_s11 + $0x50] sm:$0xff]  ;;  %v280_v19 = vld [vmem:[%s1812_s11 + $0x58] sm:$0xff] }
  0x14   : > { %v281_v20 = vld [vmem:[%s1812_s11 + $0x60] sm:$0xff]  ;;  %v282_v21 = vld [vmem:[%s1812_s11 + $0x68] sm:$0xff]  ;;  %v283_v22 = vld [vmem:[%s1812_s11 + $0x70] sm:$0xff] }
  0x15   : > { %1457 = vmatmul.mubr.msk.f32.gmra.mrb[2].mxu0 %vm292_vm1, %v270_v9  ;;  %v284_v23 = vld [vmem:[%s1812_s11 + $0x78] sm:$0xff]  ;;  %v285_v24 = vld [vmem:[%s1812_s11 + $0x80] sm:$0xff]  ;;  %v286_v25 = vld [vmem:[%s1812_s11 + $0x88] sm:$0xff] }
  0x16   : > { %1459 = vmatprep.mubr.msk.f32.mxu0 %vm1742_vm0, %v1743_v6  ;;  %v287_v26 = vld [vmem:[%s1812_s11 + $0x90] sm:$0xff] }
  0x19   : > { %1460 = vmatmul.mubr.msk.f32.gmra.mrb[4].mxu0 %vm292_vm1, %v271_v10 }
  0x1a   : > { %1462 = vmatprep.mubr.msk.f32.mxu0 %vm1742_vm0, %v1743_v6 }
  0x1d   : > { %1463 = vmatmul.mubr.msk.f32.gmra.mrb[6].mxu0 %vm292_vm1, %v272_v11 }
  0x1e   : > { %1465 = vmatprep.mubr.msk.f32.mxu0 %vm1742_vm0, %v1743_v6 }
  0x21   : > { %1466 = vmatmul.mubr.msk.f32.gmra.mrb[8].mxu0 %vm292_vm1, %v273_v12 }
  0x22   : > { %1468 = vmatprep.mubr.msk.f32.mxu0 %vm1742_vm0, %v1743_v6 }
  0x25   : > { %1469 = vmatmul.mubr.msk.f32.gmra.mrb[10].mxu0 %vm292_vm1, %v274_v13 }
  0x26   : > { %1471 = vmatprep.mubr.msk.f32.mxu0 %vm1742_vm0, %v1743_v6 }
  0x29   : > { %1472 = vmatmul.mubr.msk.f32.gmra.mrb[12].mxu0 %vm292_vm1, %v275_v14 }
  0x2a   : > { %1474 = vmatprep.mubr.msk.f32.mxu0 %vm1742_vm0, %v1743_v6 }
  0x2d   : > { %1475 = vmatmul.mubr.msk.f32.gmra.mrb[14].mxu0 %vm292_vm1, %v276_v15 }
  0x2e   : > { %1477 = vmatprep.mubr.msk.f32.mxu0 %vm1742_vm0, %v1743_v6 }
  0x31   : > { %1478 = vmatmul.mubr.msk.f32.gmra.mrb[16].mxu0 %vm292_vm1, %v277_v16 }
  0x32   : > { %1480 = vmatprep.mubr.msk.f32.mxu0 %vm1742_vm0, %v1743_v6 }
  0x35   : > { %1481 = vmatmul.mubr.msk.f32.gmra.mrb[18].mxu0 %vm292_vm1, %v278_v17 }
  0x36   : > { %1483 = vmatprep.mubr.msk.f32.mxu0 %vm1742_vm0, %v1743_v6 }
  0x39   : > { %1484 = vmatmul.mubr.msk.f32.gmra.mrb[20].mxu0 %vm292_vm1, %v279_v18 }
  0x3a   : > { %1486 = vmatprep.mubr.msk.f32.mxu0 %vm1742_vm0, %v1743_v6 }
  0x3d   : > { %1487 = vmatmul.mubr.msk.f32.gmra.mrb[22].mxu0 %vm292_vm1, %v280_v19 }
  0x3e   : > { %1489 = vmatprep.mubr.msk.f32.mxu0 %vm1742_vm0, %v1743_v6 }
  0x41   : > { %1490 = vmatmul.mubr.msk.f32.gmra.mrb[24].mxu0 %vm292_vm1, %v281_v20 }
  0x42   : > { %1492 = vmatprep.mubr.msk.f32.mxu0 %vm1742_vm0, %v1743_v6 }
  0x45   : > { %1493 = vmatmul.mubr.msk.f32.gmra.mrb[26].mxu0 %vm292_vm1, %v282_v21 }
  0x46   : > { %1495 = vmatprep.mubr.msk.f32.mxu0 %vm1742_vm0, %v1743_v6 }
  0x49   : > { %1496 = vmatmul.mubr.msk.f32.gmra.mrb[28].mxu0 %vm292_vm1, %v283_v22  ;;  %v739_v22 = vld [vmem:[%s2321_s2] sm:$0xff] }
  0x4a   : > { %1498 = vmatprep.mubr.msk.f32.mxu0 %vm1742_vm0, %v1743_v6 }
  0x4d   : > { %1499 = vmatmul.mubr.msk.f32.gmra.mrb[30].mxu0 %vm292_vm1, %v284_v23  ;;  %v740_v23 = vld [vmem:[%s2321_s2 + $0x8] sm:$0xff] }
  0x4e   : > { %1501 = vmatprep.mubr.msk.f32.mxu0 %vm1742_vm0, %v1743_v6 }
  0x51   : > { %1502 = vmatmul.mubr.msk.f32.gmra.mrb[32].mxu0 %vm292_vm1, %v285_v24  ;;  %v1639_v24 = vpack.c.bf16 %v740_v23, %v739_v22 }
  0x52   : > { %1504 = vmatprep.mubr.msk.f32.mxu0 %vm1742_vm0, %v1743_v6 }
  0x53   : > { %1640 = vmatpush3.bf16.msra.mxu0 %v1639_v24  ;;  %1645 = vmatpush3.bf16.msra.mxu1 %v1639_v24 }
  0x54   : > { %1641 = vmatprep.subr.bf16.mxu1 %v1741_v3 }
  0x55   : > { %1505 = vmatmul.mubr.msk.f32.gmra.mrb[34].mxu0 %vm292_vm1, %v286_v25 }
  0x56   : > { %1507 = vmatprep.mubr.msk.f32.mxu0 %vm1742_vm0, %v1743_v6 }
  0x59   : > { %1508 = vmatmul.mubr.msk.f32.gmra.mrb[36].mxu0 %vm292_vm1, %v287_v26 }
  0x5a   : > { %1514 = vmatprep.mubr.msk.f32.mxu0 %vm1742_vm0, %v1743_v6 }
  0xe4   : > { %v1891_v27 = vpop.f32.mrb[0].mxu0 }
  0xe5   : > { %v1455_v28 = vpop.f32.mrb[1].mxu0  ;;  %v511_v29 = vsel %vm510_vm2, %v1891_v27, -inf }
  0xe6   : > { %512 = vmax.xlane.f32.xlu0 %v511_v29 }
  0xe8   : > { %v1895_v30 = vpop.f32.mrb[2].mxu0 }
  0xe9   : > { %v1458_v31 = vpop.f32.mrb[3].mxu0  ;;  %v514_v32 = vsel %vm510_vm2, %v1895_v30, -inf }
  0xea   : > { %515 = vmax.xlane.f32.xlu0 %v514_v32 }
  0xec   : > { %v1899_v33 = vpop.f32.mrb[4].mxu0 }
  0xed   : > { %v1461_v34 = vpop.f32.mrb[5].mxu0  ;;  %v517_v35 = vsel %vm510_vm2, %v1899_v33, -inf }
  0xee   : > { %518 = vmax.xlane.f32.xlu1 %v517_v35 }
  0xf0   : > { %v1903_v36 = vpop.f32.mrb[6].mxu0 }
  0xf1   : > { %v1464_v37 = vpop.f32.mrb[7].mxu0  ;;  %v520_v38 = vsel %vm510_vm2, %v1903_v36, -inf }
  0xf2   : > { %521 = vmax.xlane.f32.xlu1 %v520_v38 }
  0xf4   : > { %v1907_v39 = vpop.f32.mrb[8].mxu0 }
  0xf5   : > { %v1467_v40 = vpop.f32.mrb[9].mxu0  ;;  %v523_v41 = vsel %vm510_vm2, %v1907_v39, -inf }
  0xf6   : > { %524 = vmax.xlane.f32.xlu0 %v523_v41 }
  0xf8   : > { %v1911_v42 = vpop.f32.mrb[10].mxu0 }
  0xf9   : > { %v1470_v43 = vpop.f32.mrb[11].mxu0  ;;  %v526_v44 = vsel %vm510_vm2, %v1911_v42, -inf }
  0xfa   : > { %527 = vmax.xlane.f32.xlu1 %v526_v44 }
  0xfc   : > { %v1915_v45 = vpop.f32.mrb[12].mxu0 }
  0xfd   : > { %v1473_v46 = vpop.f32.mrb[13].mxu0  ;;  %v529_v47 = vsel %vm510_vm2, %v1915_v45, -inf }
  0xfe   : > { %530 = vmax.xlane.f32.xlu0 %v529_v47 }
 0x100   : > { %v1919_v48 = vpop.f32.mrb[14].mxu0 }
 0x101   : > { %v1476_v49 = vpop.f32.mrb[15].mxu0  ;;  %v532_v50 = vsel %vm510_vm2, %v1919_v48, -inf }
 0x102   : > { %533 = vmax.xlane.f32.xlu1 %v532_v50 }
 0x104   : > { %v1923_v51 = vpop.f32.mrb[16].mxu0 }
 0x105   : > { %v1479_v52 = vpop.f32.mrb[17].mxu0  ;;  %v535_v53 = vsel %vm510_vm2, %v1923_v51, -inf }
 0x106   : > { %536 = vmax.xlane.f32.xlu0 %v535_v53 }
 0x108   : > { %v1927_v54 = vpop.f32.mrb[18].mxu0 }
 0x109   : > { %v1482_v55 = vpop.f32.mrb[19].mxu0  ;;  %v538_v56 = vsel %vm510_vm2, %v1927_v54, -inf }
 0x10a   : > { %539 = vmax.xlane.f32.xlu1 %v538_v56 }
 0x10c   : > { %v1931_v57 = vpop.f32.mrb[20].mxu0 }
 0x10d   : > { %v1485_v58 = vpop.f32.mrb[21].mxu0  ;;  %v541_v59 = vsel %vm510_vm2, %v1931_v57, -inf }
 0x10e   : > { %542 = vmax.xlane.f32.xlu0 %v541_v59 }
 0x110   : > { %v1935_v60 = vpop.f32.mrb[22].mxu0 }
 0x111   : > { %v1488_v61 = vpop.f32.mrb[23].mxu0  ;;  %v544_v62 = vsel %vm510_vm2, %v1935_v60, -inf }
 0x112   : > { %545 = vmax.xlane.f32.xlu1 %v544_v62 }
 0x114   : > { %v1939_v63 = vpop.f32.mrb[24].mxu0 }
 0x115   : > { %v1491_v0 = vpop.f32.mrb[25].mxu0  ;;  %v547_v1 = vsel %vm510_vm2, %v1939_v63, -inf }
 0x116   : > { %548 = vmax.xlane.f32.xlu0 %v547_v1 }
 0x118   : > { %v1943_v2 = vpop.f32.mrb[26].mxu0 }
 0x119   : > { %v1494_v4 = vpop.f32.mrb[27].mxu0  ;;  %v550_v5 = vsel %vm510_vm2, %v1943_v2, -inf }
 0x11a   : > { %551 = vmax.xlane.f32.xlu1 %v550_v5 }
 0x11c   : > { %v1947_v7 = vpop.f32.mrb[28].mxu0 }
 0x11d   : > { %v1497_v8 = vpop.f32.mrb[29].mxu0  ;;  %v553_v9 = vsel %vm510_vm2, %v1947_v7, -inf }
 0x11e   : > { %554 = vmax.xlane.f32.xlu0 %v553_v9 }
 0x120   : > { %v1951_v10 = vpop.f32.mrb[30].mxu0 }
 0x121   : > { %v1500_v11 = vpop.f32.mrb[31].mxu0  ;;  %v556_v12 = vsel %vm510_vm2, %v1951_v10, -inf }
 0x122   : > { %557 = vmax.xlane.f32.xlu1 %v556_v12 }
 0x124   : > { %v1955_v13 = vpop.f32.mrb[32].mxu0 }
 0x125   : > { %v1503_v14 = vpop.f32.mrb[33].mxu0  ;;  %v559_v15 = vsel %vm510_vm2, %v1955_v13, -inf }
 0x126   : > { %560 = vmax.xlane.f32.xlu0 %v559_v15 }
 0x128   : > { %v1959_v16 = vpop.f32.mrb[34].mxu0 }
 0x129   : > { %v1506_v17 = vpop.f32.mrb[35].mxu0  ;;  %v562_v18 = vsel %vm510_vm2, %v1959_v16, -inf }
 0x12a   : > { %563 = vmax.xlane.f32.xlu1 %v562_v18 }
 0x12c   : > { %v1963_v19 = vpop.f32.mrb[36].mxu0 }
 0x12d   : > { %v1509_v20 = vpop.f32.mrb[37].mxu0  ;;  %v565_v21 = vsel %vm510_vm2, %v1963_v19, -inf }
 0x12e   : > { %566 = vmax.xlane.f32.xlu0 %v565_v21 }
 0x173   : > { %v513_v25 = vpop.xlane.xlu0 %512 }
 0x174   : > { %v568_v26 = vsub.f32 %v1891_v27, %v513_v25 }
 0x176   : > { %v587_v28 = vmul.f32 1.442695, %v568_v26 }
 0x177   : > { %v516_v29 = vpop.xlane.xlu0 %515 }
 0x178   : > { %1657 = vpow2.f32 %v587_v28  ;;  %v569_v31 = vsub.f32 %v1895_v30, %v516_v29 }
 0x17a   : > { %v589_v32 = vmul.f32 1.442695, %v569_v31 }
 0x17b   : > { %v519_v34 = vpop.xlane.xlu1 %518 }
 0x17c   : > { %1659 = vpow2.f32 %v589_v32  ;;  %v570_v35 = vsub.f32 %v1899_v33, %v519_v34 }
 0x17e   : > { %v591_v37 = vmul.f32 1.442695, %v570_v35 }
 0x17f   : > { %v522_v38 = vpop.xlane.xlu1 %521 }
 0x180   : > { %1661 = vpow2.f32 %v591_v37  ;;  %v571_v40 = vsub.f32 %v1903_v36, %v522_v38 }
 0x182   : > { %v1978_v41 = vpop.eup %1657  ;;  %v593_v3 = vmul.f32 1.442695, %v571_v40 }
 0x183   : > { %v525_v43 = vpop.xlane.xlu0 %524  ;;  %v625_v27 = vsel %vm510_vm2, %v1978_v41, 0.0 }
 0x184   : > { %1663 = vpow2.f32 %v593_v3  ;;  %v572_v30 = vsub.f32 %v1907_v39, %v525_v43  ;;  %626 = vadd.xlane.f32.xlu1 %v625_v27 }
 0x186   : > { %v1983_v44 = vpop.eup %1659  ;;  %v595_v46 = vmul.f32 1.442695, %v572_v30 }
 0x187   : > { %v528_v33 = vpop.xlane.xlu1 %527  ;;  %v628_v47 = vsel %vm510_vm2, %v1983_v44, 0.0 }
 0x188   : > { %1665 = vpow2.f32 %v595_v46  ;;  %v573_v36 = vsub.f32 %v1911_v42, %v528_v33  ;;  %629 = vadd.xlane.f32.xlu0 %v628_v47 }
 0x18a   : > { %v1988_v49 = vpop.eup %1661  ;;  %v597_v50 = vmul.f32 1.442695, %v573_v36 }
 0x18b   : > { %v531_v52 = vpop.xlane.xlu0 %530  ;;  %v631_v53 = vsel %vm510_vm2, %v1988_v49, 0.0 }
 0x18c   : > { %1667 = vpow2.f32 %v597_v50  ;;  %v574_v39 = vsub.f32 %v1915_v45, %v531_v52  ;;  %632 = vadd.xlane.f32.xlu1 %v631_v53 }
 0x18e   : > { %v1993_v55 = vpop.eup %1663  ;;  %v599_v56 = vmul.f32 1.442695, %v574_v39 }
 0x18f   : > { %v534_v58 = vpop.xlane.xlu1 %533  ;;  %v634_v59 = vsel %vm510_vm2, %v1993_v55, 0.0 }
 0x190   : > { %1669 = vpow2.f32 %v599_v56  ;;  %v575_v42 = vsub.f32 %v1919_v48, %v534_v58  ;;  %635 = vadd.xlane.f32.xlu0 %v634_v59 }
 0x192   : > { %v1998_v61 = vpop.eup %1665  ;;  %v601_v62 = vmul.f32 1.442695, %v575_v42 }
 0x193   : > { %v537_v0 = vpop.xlane.xlu0 %536  ;;  %v637_v1 = vsel %vm510_vm2, %v1998_v61, 0.0 }
 0x194   : > { %1671 = vpow2.f32 %v601_v62  ;;  %v576_v45 = vsub.f32 %v1923_v51, %v537_v0  ;;  %638 = vadd.xlane.f32.xlu1 %v637_v1 }
 0x196   : > { %v2003_v4 = vpop.eup %1667  ;;  %v603_v5 = vmul.f32 1.442695, %v576_v45 }
 0x197   : > { %v540_v8 = vpop.xlane.xlu1 %539  ;;  %v640_v9 = vsel %vm510_vm2, %v2003_v4, 0.0 }
 0x198   : > { %1673 = vpow2.f32 %v603_v5  ;;  %v577_v48 = vsub.f32 %v1927_v54, %v540_v8  ;;  %641 = vadd.xlane.f32.xlu0 %v640_v9 }
 0x19a   : > { %v2008_v11 = vpop.eup %1669  ;;  %v605_v12 = vmul.f32 1.442695, %v577_v48 }
 0x19b   : > { %v543_v14 = vpop.xlane.xlu0 %542  ;;  %v643_v15 = vsel %vm510_vm2, %v2008_v11, 0.0 }
 0x19c   : > { %1675 = vpow2.f32 %v605_v12  ;;  %v578_v51 = vsub.f32 %v1931_v57, %v543_v14  ;;  %644 = vadd.xlane.f32.xlu1 %v643_v15 }
 0x19e   : > { %v2013_v17 = vpop.eup %1671  ;;  %v607_v18 = vmul.f32 1.442695, %v578_v51 }
 0x19f   : > { %v546_v20 = vpop.xlane.xlu1 %545  ;;  %v646_v21 = vsel %vm510_vm2, %v2013_v17, 0.0 }
 0x1a0   : > { %1677 = vpow2.f32 %v607_v18  ;;  %v579_v54 = vsub.f32 %v1935_v60, %v546_v20  ;;  %647 = vadd.xlane.f32.xlu0 %v646_v21 }
 0x1a2   : > { %v2018_v22 = vpop.eup %1673  ;;  %v609_v23 = vmul.f32 1.442695, %v579_v54 }
 0x1a3   : > { %v549_v24 = vpop.xlane.xlu0 %548  ;;  %v649_v25 = vsel %vm510_vm2, %v2018_v22, 0.0 }
 0x1a4   : > { %1679 = vpow2.f32 %v609_v23  ;;  %v580_v57 = vsub.f32 %v1939_v63, %v549_v24  ;;  %650 = vadd.xlane.f32.xlu1 %v649_v25 }
 0x1a6   : > { %v2023_v26 = vpop.eup %1675  ;;  %v611_v28 = vmul.f32 1.442695, %v580_v57 }
 0x1a7   : > { %v552_v29 = vpop.xlane.xlu1 %551  ;;  %v652_v31 = vsel %vm510_vm2, %v2023_v26, 0.0 }
 0x1a8   : > { %1681 = vpow2.f32 %v611_v28  ;;  %v581_v60 = vsub.f32 %v1943_v2, %v552_v29  ;;  %653 = vadd.xlane.f32.xlu0 %v652_v31 }
 0x1aa   : > { %v2028_v32 = vpop.eup %1677  ;;  %v613_v34 = vmul.f32 1.442695, %v581_v60 }
 0x1ab   : > { %v555_v35 = vpop.xlane.xlu0 %554  ;;  %v655_v37 = vsel %vm510_vm2, %v2028_v32, 0.0 }
 0x1ac   : > { %1683 = vpow2.f32 %v613_v34  ;;  %v582_v63 = vsub.f32 %v1947_v7, %v555_v35  ;;  %656 = vadd.xlane.f32.xlu1 %v655_v37 }
 0x1ae   : > { %v2033_v38 = vpop.eup %1679  ;;  %v615_v40 = vmul.f32 1.442695, %v582_v63 }
 0x1af   : > { %v558_v3 = vpop.xlane.xlu1 %557  ;;  %v658_v43 = vsel %vm510_vm2, %v2033_v38, 0.0 }
 0x1b0   : > { %1685 = vpow2.f32 %v615_v40  ;;  %v583_v2 = vsub.f32 %v1951_v10, %v558_v3  ;;  %659 = vadd.xlane.f32.xlu0 %v658_v43  ;;  %v984_v40 = vld [vmem:[%s2323_s4] sm:$0xff] }
 0x1b2   : > { %v2038_v27 = vpop.eup %1681  ;;  %v617_v30 = vmul.f32 1.442695, %v583_v2 }
 0x1b3   : > { %v561_v46 = vpop.xlane.xlu0 %560  ;;  %v661_v33 = vsel %vm510_vm2, %v2038_v27, 0.0 }
 0x1b4   : > { %1687 = vpow2.f32 %v617_v30  ;;  %v584_v7 = vsub.f32 %v1955_v13, %v561_v46  ;;  %662 = vadd.xlane.f32.xlu1 %v661_v33 }
 0x1b6   : > { %v2043_v47 = vpop.eup %1683  ;;  %v619_v36 = vmul.f32 1.442695, %v584_v7 }
 0x1b7   : > { %v564_v50 = vpop.xlane.xlu1 %563  ;;  %v664_v52 = vsel %vm510_vm2, %v2043_v47, 0.0 }
 0x1b8   : > { %1689 = vpow2.f32 %v619_v36  ;;  %v585_v10 = vsub.f32 %v1959_v16, %v564_v50  ;;  %665 = vadd.xlane.f32.xlu0 %v664_v52 }
 0x1ba   : > { %v2048_v53 = vpop.eup %1685  ;;  %v621_v39 = vmul.f32 1.442695, %v585_v10 }
 0x1bb   : > { %v567_v56 = vpop.xlane.xlu0 %566  ;;  %v667_v58 = vsel %vm510_vm2, %v2048_v53, 0.0 }
 0x1bc   : > { %1691 = vpow2.f32 %v621_v39  ;;  %v586_v13 = vsub.f32 %v1963_v19, %v567_v56  ;;  %668 = vadd.xlane.f32.xlu1 %v667_v58 }
 0x1be   : > { %v2053_v59 = vpop.eup %1687  ;;  %v623_v42 = vmul.f32 1.442695, %v586_v13 }
 0x1bf   : > { %v670_v62 = vsel %vm510_vm2, %v2053_v59, 0.0 }
 0x1c0   : > { %1693 = vpow2.f32 %v623_v42  ;;  %671 = vadd.xlane.f32.xlu0 %v670_v62 }
 0x1c2   : > { %v2057_v16 = vpop.eup %1689 }
 0x1c3   : > { %v673_v0 = vsel %vm510_vm2, %v2057_v16, 0.0 }
 0x1c4   : > { %674 = vadd.xlane.f32.xlu1 %v673_v0 }
 0x1c6   : > { %v2061_v1 = vpop.eup %1691 }
 0x1c7   : > { %v676_v19 = vsel %vm510_vm2, %v2061_v1, 0.0 }
 0x1c8   : > { %677 = vadd.xlane.f32.xlu0 %v676_v19 }
 0x1ca   : > { %v2065_v45 = vpop.eup %1693 }
 0x1cb   : > { %v679_v5 = vsel %vm510_vm2, %v2065_v45, 0.0 }
 0x1cc   : > { %680 = vadd.xlane.f32.xlu1 %v679_v5 }
 0x211   : > { %v627_v8 = vpop.xlane.xlu1 %626 }
 0x212   : > { %1695 = vrcp.f32 %v627_v8 }
 0x215   : > { %v630_v9 = vpop.xlane.xlu0 %629 }
 0x216   : > { %1697 = vrcp.f32 %v630_v9 }
 0x219   : > { %v633_v48 = vpop.xlane.xlu1 %632 }
 0x21a   : > { %1699 = vrcp.f32 %v633_v48 }
 0x21c   : > { %v1696_v12 = vpop.eup %1695 }
 0x21d   : > { %v683_v14 = vmul.f32 %v1696_v12, %v1978_v41  ;;  %v636_v15 = vpop.xlane.xlu0 %635 }
 0x21e   : > { %1701 = vrcp.f32 %v636_v15 }
 0x21f   : > { %720 = vst.msk [vmem:[%s2073_s18] sm:$0xff] %vm510_vm2, %v683_v14  ;;  %1515 = vmatmul.mubr.msk.f32.vlgmr.msra.gmra.mrb[38].mxu0 %vm510_vm2, %v683_v14 }
 0x220   : > { %v1698_v51 = vpop.eup %1697  ;;  %1517 = vmatprep.mubr.msk.f32.mxu0 %vm1742_vm0, %v1743_v6 }
 0x221   : > { %v639_v18 = vpop.xlane.xlu1 %638  ;;  %v685_v20 = vmul.f32 %v1698_v51, %v1983_v44 }
 0x222   : > { %1703 = vrcp.f32 %v639_v18 }
 0x223   : > { %721 = vst.msk [vmem:[%s2073_s18 + $0x8] sm:$0xff] %vm510_vm2, %v685_v20  ;;  %1518 = vmatmul.mubr.msk.f32.gmra.mrb[40].mxu0 %vm510_vm2, %v685_v20 }
 0x224   : > { %v1700_v41 = vpop.eup %1699  ;;  %1520 = vmatprep.mubr.msk.f32.mxu0 %vm1742_vm0, %v1743_v6 }
 0x225   : > { %v642_v21 = vpop.xlane.xlu0 %641  ;;  %v687_v54 = vmul.f32 %v1700_v41, %v1988_v49 }
 0x226   : > { %1705 = vrcp.f32 %v642_v21 }
 0x227   : > { %722 = vst.msk [vmem:[%s2073_s18 + $0x10] sm:$0xff] %vm510_vm2, %v687_v54  ;;  %1521 = vmatmul.mubr.msk.f32.gmra.mrb[42].mxu0 %vm510_vm2, %v687_v54 }
 0x228   : > { %v1702_v44 = vpop.eup %1701  ;;  %1523 = vmatprep.mubr.msk.f32.mxu0 %vm1742_vm0, %v1743_v6 }
 0x229   : > { %v645_v23 = vpop.xlane.xlu1 %644  ;;  %v689_v24 = vmul.f32 %v1702_v44, %v1993_v55 }
 0x22a   : > { %1707 = vrcp.f32 %v645_v23 }
 0x22b   : > { %723 = vst.msk [vmem:[%s2073_s18 + $0x18] sm:$0xff] %vm510_vm2, %v689_v24  ;;  %1524 = vmatmul.mubr.msk.f32.gmra.mrb[44].mxu0 %vm510_vm2, %v689_v24 }
 0x22c   : > { %v1704_v49 = vpop.eup %1703  ;;  %1526 = vmatprep.mubr.msk.f32.mxu0 %vm1742_vm0, %v1743_v6 }
 0x22d   : > { %v648_v25 = vpop.xlane.xlu0 %647  ;;  %v691_v57 = vmul.f32 %v1704_v49, %v1998_v61 }
 0x22e   : > { %1709 = vrcp.f32 %v648_v25 }
 0x22f   : > { %724 = vst.msk [vmem:[%s2073_s18 + $0x20] sm:$0xff] %vm510_vm2, %v691_v57  ;;  %1527 = vmatmul.mubr.msk.f32.gmra.mrb[46].mxu0 %vm510_vm2, %v691_v57 }
 0x230   : > { %v1706_v55 = vpop.eup %1705  ;;  %1529 = vmatprep.mubr.msk.f32.mxu0 %vm1742_vm0, %v1743_v6 }
 0x231   : > { %v651_v28 = vpop.xlane.xlu1 %650  ;;  %v693_v29 = vmul.f32 %v1706_v55, %v2003_v4 }
 0x232   : > { %1711 = vrcp.f32 %v651_v28 }
 0x233   : > { %725 = vst.msk [vmem:[%s2073_s18 + $0x28] sm:$0xff] %vm510_vm2, %v693_v29  ;;  %1530 = vmatmul.mubr.msk.f32.gmra.mrb[48].mxu0 %vm510_vm2, %v693_v29 }
 0x234   : > { %v1708_v61 = vpop.eup %1707  ;;  %1532 = vmatprep.mubr.msk.f32.mxu0 %vm1742_vm0, %v1743_v6 }
 0x235   : > { %v654_v31 = vpop.xlane.xlu0 %653  ;;  %v695_v60 = vmul.f32 %v1708_v61, %v2008_v11 }
 0x236   : > { %1713 = vrcp.f32 %v654_v31 }
 0x237   : > { %726 = vst.msk [vmem:[%s2073_s18 + $0x30] sm:$0xff] %vm510_vm2, %v695_v60  ;;  %1533 = vmatmul.mubr.msk.f32.gmra.mrb[50].mxu0 %vm510_vm2, %v695_v60 }
 0x238   : > { %v1710_v4 = vpop.eup %1709  ;;  %1535 = vmatprep.mubr.msk.f32.mxu0 %vm1742_vm0, %v1743_v6 }
 0x239   : > { %v657_v34 = vpop.xlane.xlu1 %656  ;;  %v697_v35 = vmul.f32 %v1710_v4, %v2013_v17  ;;  %v985_v17 = vld [vmem:[%s2323_s4 + $0x8] sm:$0xff] }
 0x23a   : > { %1715 = vrcp.f32 %v657_v34  ;;  %v1642_v43 = vpack.c.bf16 %v985_v17, %v984_v40 }
 0x23b   : > { %727 = vst.msk [vmem:[%s2073_s18 + $0x38] sm:$0xff] %vm510_vm2, %v697_v35  ;;  %1536 = vmatmul.mubr.msk.f32.gmra.mrb[52].mxu0 %vm510_vm2, %v697_v35 }
 0x23c   : > { %v1712_v11 = vpop.eup %1711  ;;  %1538 = vmatprep.mubr.msk.f32.mxu0 %vm1742_vm0, %v1743_v6 }
 0x23d   : > { %v660_v37 = vpop.xlane.xlu0 %659  ;;  %v699_v63 = vmul.f32 %v1712_v11, %v2018_v22 }
 0x23e   : > { %1717 = vrcp.f32 %v660_v37 }
 0x23f   : > { %728 = vst.msk [vmem:[%s2073_s18 + $0x40] sm:$0xff] %vm510_vm2, %v699_v63  ;;  %1539 = vmatmul.mubr.msk.f32.gmra.mrb[54].mxu0 %vm510_vm2, %v699_v63 }
 0x240   : > { %v1714_v3 = vpop.eup %1713 }
 0x241   : > { %v663_v2 = vpop.xlane.xlu1 %662  ;;  %v701_v30 = vmul.f32 %v1714_v3, %v2023_v26 }
 0x242   : > { %1719 = vrcp.f32 %v663_v2 }
 0x243   : > { %729 = vst.msk [vmem:[%s2073_s18 + $0x48] sm:$0xff] %vm510_vm2, %v701_v30  ;;  %1542 = vmatmul.mubr.msk.f32.vlgmr.msra.gmra.mrb[0].mxu1 %vm510_vm2, %v701_v30 }
 0x244   : > { %v1716_v22 = vpop.eup %1715  ;;  %1544 = vmatprep.mubr.msk.f32.mxu1 %vm1742_vm0, %v1743_v6  ;;  %1643 = vmatpush3.bf16.msra.mxu1 %v1642_v43 }
 0x245   : > { %v666_v46 = vpop.xlane.xlu0 %665  ;;  %v703_v33 = vmul.f32 %v1716_v22, %v2028_v32 }
 0x246   : > { %1721 = vrcp.f32 %v666_v46 }
 0x247   : > { %730 = vst.msk [vmem:[%s2073_s18 + $0x50] sm:$0xff] %vm510_vm2, %v703_v33  ;;  %1545 = vmatmul.mubr.msk.f32.gmra.mrb[2].mxu1 %vm510_vm2, %v703_v33 }
 0x248   : > { %v1718_v26 = vpop.eup %1717  ;;  %1547 = vmatprep.mubr.msk.f32.mxu1 %vm1742_vm0, %v1743_v6 }
 0x249   : > { %v669_v7 = vpop.xlane.xlu1 %668  ;;  %v705_v36 = vmul.f32 %v1718_v26, %v2033_v38 }
 0x24a   : > { %1723 = vrcp.f32 %v669_v7 }
 0x24b   : > { %731 = vst.msk [vmem:[%s2073_s18 + $0x58] sm:$0xff] %vm510_vm2, %v705_v36  ;;  %1548 = vmatmul.mubr.msk.f32.gmra.mrb[4].mxu1 %vm510_vm2, %v705_v36 }
 0x24c   : > { %v1720_v32 = vpop.eup %1719  ;;  %1550 = vmatprep.mubr.msk.f32.mxu1 %vm1742_vm0, %v1743_v6 }
 0x24d   : > { %v672_v50 = vpop.xlane.xlu0 %671  ;;  %v707_v52 = vmul.f32 %v1720_v32, %v2038_v27 }
 0x24e   : > { %1725 = vrcp.f32 %v672_v50 }
 0x24f   : > { %732 = vst.msk [vmem:[%s2073_s18 + $0x60] sm:$0xff] %vm510_vm2, %v707_v52  ;;  %1551 = vmatmul.mubr.msk.f32.gmra.mrb[6].mxu1 %vm510_vm2, %v707_v52 }
 0x250   : > { %v1722_v38 = vpop.eup %1721  ;;  %1553 = vmatprep.mubr.msk.f32.mxu1 %vm1742_vm0, %v1743_v6 }
 0x251   : > { %v675_v10 = vpop.xlane.xlu1 %674  ;;  %v709_v39 = vmul.f32 %v1722_v38, %v2043_v47 }
 0x252   : > { %1727 = vrcp.f32 %v675_v10 }
 0x253   : > { %733 = vst.msk [vmem:[%s2073_s18 + $0x68] sm:$0xff] %vm510_vm2, %v709_v39  ;;  %1554 = vmatmul.mubr.msk.f32.gmra.mrb[8].mxu1 %vm510_vm2, %v709_v39 }
 0x254   : > { %v1724_v27 = vpop.eup %1723  ;;  %1556 = vmatprep.mubr.msk.f32.mxu1 %vm1742_vm0, %v1743_v6 }
 0x255   : > { %v678_v56 = vpop.xlane.xlu0 %677  ;;  %v711_v58 = vmul.f32 %v1724_v27, %v2048_v53 }
 0x256   : > { %1729 = vrcp.f32 %v678_v56 }
 0x257   : > { %734 = vst.msk [vmem:[%s2073_s18 + $0x70] sm:$0xff] %vm510_vm2, %v711_v58  ;;  %1557 = vmatmul.mubr.msk.f32.gmra.mrb[10].mxu1 %vm510_vm2, %v711_v58 }
 0x258   : > { %v1726_v47 = vpop.eup %1725  ;;  %1559 = vmatprep.mubr.msk.f32.mxu1 %vm1742_vm0, %v1743_v6 }
 0x259   : > { %v681_v13 = vpop.xlane.xlu1 %680  ;;  %v713_v42 = vmul.f32 %v1726_v47, %v2053_v59 }
 0x25a   : > { %1731 = vrcp.f32 %v681_v13 }
 0x25b   : > { %735 = vst.msk [vmem:[%s2073_s18 + $0x78] sm:$0xff] %vm510_vm2, %v713_v42  ;;  %1560 = vmatmul.mubr.msk.f32.gmra.mrb[12].mxu1 %vm510_vm2, %v713_v42 }
 0x25c   : > { %v1728_v53 = vpop.eup %1727  ;;  %1562 = vmatprep.mubr.msk.f32.mxu1 %vm1742_vm0, %v1743_v6 }
 0x25d   : > { %v715_v62 = vmul.f32 %v1728_v53, %v2057_v16 }
 0x25f   : > { %736 = vst.msk [vmem:[%s2073_s18 + $0x80] sm:$0xff] %vm510_vm2, %v715_v62  ;;  %1563 = vmatmul.mubr.msk.f32.gmra.mrb[14].mxu1 %vm510_vm2, %v715_v62 }
 0x260   : > { %v1730_v0 = vpop.eup %1729  ;;  %1565 = vmatprep.mubr.msk.f32.mxu1 %vm1742_vm0, %v1743_v6 }
 0x261   : > { %v717_v59 = vmul.f32 %v1730_v0, %v2061_v1  ;;  %v2196_v1 = vld [vmem:[%s2322_s3] ss:$0 sm:$0xff] }
 0x263   : > { %737 = vst.msk [vmem:[%s2073_s18 + $0x88] sm:$0xff] %vm510_vm2, %v717_v59  ;;  %1566 = vmatmul.mubr.msk.f32.gmra.mrb[16].mxu1 %vm510_vm2, %v717_v59 }
 0x264   : > { %v1732_v19 = vpop.eup %1731  ;;  %1568 = vmatprep.mubr.msk.f32.mxu1 %vm1742_vm0, %v1743_v6 }
 0x265   : > { %v719_v16 = vmul.f32 %v1732_v19, %v2065_v45 }
 0x267   : > { %738 = vst.msk [vmem:[%s2073_s18 + $0x90] sm:$0xff] %vm510_vm2, %v719_v16  ;;  %1569 = vmatmul.mubr.msk.f32.gmra.mrb[18].mxu1 %vm510_vm2, %v719_v16 }
 0x268   : > { %1575 = vmatprep.mubr.msk.f32.mxu1 %vm1742_vm0, %v1743_v6 }
 0x2f2   : > { %v871_v5 = vpop.f32.mrb[38].mxu0 }
 0x2f3   : > { %v872_v8 = vadd.f32 %v2196_v1, %v871_v5  ;;  %v1516_v9 = vpop.f32.mrb[39].mxu0 }
 0x2f5   : > { %v965_v48 = vmax.f32 %v872_v8, 0.0 }
 0x2f6   : > { %v876_v12 = vpop.f32.mrb[40].mxu0 }
 0x2f7   : > { %v877_v45 = vadd.f32 %v2196_v1, %v876_v12  ;;  %v1519_v14 = vpop.f32.mrb[41].mxu0  ;;  %1576 = vmatmul.mubr.msk.f32.vlgmr.msra.gmra.mrb[20].mxu1 %vm510_vm2, %v965_v48 }
 0x2f8   : > { %1578 = vmatprep.mubr.msk.f32.mxu1 %vm1742_vm0, %v1743_v6 }
 0x2f9   : > { %v966_v15 = vmax.f32 %v877_v45, 0.0 }
 0x2fa   : > { %v881_v51 = vpop.f32.mrb[42].mxu0 }
 0x2fb   : > { %v882_v18 = vadd.f32 %v2196_v1, %v881_v51  ;;  %v1522_v20 = vpop.f32.mrb[43].mxu0  ;;  %1579 = vmatmul.mubr.msk.f32.gmra.mrb[22].mxu1 %vm510_vm2, %v966_v15 }
 0x2fc   : > { %1581 = vmatprep.mubr.msk.f32.mxu1 %vm1742_vm0, %v1743_v6 }
 0x2fd   : > { %v967_v41 = vmax.f32 %v882_v18, 0.0 }
 0x2fe   : > { %v886_v21 = vpop.f32.mrb[44].mxu0 }
 0x2ff   : > { %v887_v54 = vadd.f32 %v2196_v1, %v886_v21  ;;  %v1525_v44 = vpop.f32.mrb[45].mxu0  ;;  %1582 = vmatmul.mubr.msk.f32.gmra.mrb[24].mxu1 %vm510_vm2, %v967_v41 }
 0x300   : > { %1584 = vmatprep.mubr.msk.f32.mxu1 %vm1742_vm0, %v1743_v6 }
 0x301   : > { %v968_v23 = vmax.f32 %v887_v54, 0.0 }
 0x302   : > { %v891_v24 = vpop.f32.mrb[46].mxu0 }
 0x303   : > { %v892_v49 = vadd.f32 %v2196_v1, %v891_v24  ;;  %v1528_v25 = vpop.f32.mrb[47].mxu0  ;;  %1585 = vmatmul.mubr.msk.f32.gmra.mrb[26].mxu1 %vm510_vm2, %v968_v23 }
 0x304   : > { %1587 = vmatprep.mubr.msk.f32.mxu1 %vm1742_vm0, %v1743_v6 }
 0x305   : > { %v969_v57 = vmax.f32 %v892_v49, 0.0 }
 0x306   : > { %v896_v55 = vpop.f32.mrb[48].mxu0 }
 0x307   : > { %v897_v28 = vadd.f32 %v2196_v1, %v896_v55  ;;  %v1531_v29 = vpop.f32.mrb[49].mxu0  ;;  %1588 = vmatmul.mubr.msk.f32.gmra.mrb[28].mxu1 %vm510_vm2, %v969_v57 }
 0x308   : > { %1590 = vmatprep.mubr.msk.f32.mxu1 %vm1742_vm0, %v1743_v6 }
 0x309   : > { %v970_v61 = vmax.f32 %v897_v28, 0.0 }
 0x30a   : > { %v901_v31 = vpop.f32.mrb[50].mxu0 }
 0x30b   : > { %v902_v60 = vadd.f32 %v2196_v1, %v901_v31  ;;  %v1534_v4 = vpop.f32.mrb[51].mxu0  ;;  %1591 = vmatmul.mubr.msk.f32.gmra.mrb[30].mxu1 %vm510_vm2, %v970_v61 }
 0x30c   : > { %1593 = vmatprep.mubr.msk.f32.mxu1 %vm1742_vm0, %v1743_v6 }
 0x30d   : > { %v971_v34 = vmax.f32 %v902_v60, 0.0 }
 0x30e   : > { %v906_v35 = vpop.f32.mrb[52].mxu0 }
 0x30f   : > { %v907_v11 = vadd.f32 %v2196_v1, %v906_v35  ;;  %v1537_v37 = vpop.f32.mrb[53].mxu0  ;;  %1594 = vmatmul.mubr.msk.f32.gmra.mrb[32].mxu1 %vm510_vm2, %v971_v34 }
 0x310   : > { %1596 = vmatprep.mubr.msk.f32.mxu1 %vm1742_vm0, %v1743_v6 }
 0x311   : > { %v972_v63 = vmax.f32 %v907_v11, 0.0 }
 0x312   : > { %v911_v40 = vpop.f32.mrb[54].mxu0 }
 0x313   : > { %v912_v17 = vadd.f32 %v2196_v1, %v911_v40  ;;  %v1540_v3 = vpop.f32.mrb[55].mxu0  ;;  %1597 = vmatmul.mubr.msk.f32.gmra.mrb[34].mxu1 %vm510_vm2, %v972_v63 }
 0x314   : > { %1599 = vmatprep.mubr.msk.f32.mxu1 %vm1742_vm0, %v1743_v6 }
 0x315   : > { %v973_v43 = vmax.f32 %v912_v17, 0.0 }
 0x316   : > { %v916_v2 = vpop.f32.mrb[0].mxu1 }
 0x317   : > { %v917_v30 = vadd.f32 %v2196_v1, %v916_v2  ;;  %v1543_v22 = vpop.f32.mrb[1].mxu1  ;;  %1600 = vmatmul.mubr.msk.f32.gmra.mrb[36].mxu1 %vm510_vm2, %v973_v43 }
 0x318   : > { %1602 = vmatprep.mubr.msk.f32.mxu1 %vm1742_vm0, %v1743_v6 }
 0x319   : > { %v974_v46 = vmax.f32 %v917_v30, 0.0 }
 0x31a   : > { %v921_v33 = vpop.f32.mrb[2].mxu1 }
 0x31b   : > { %v922_v26 = vadd.f32 %v2196_v1, %v921_v33  ;;  %v1546_v7 = vpop.f32.mrb[3].mxu1  ;;  %1603 = vmatmul.mubr.msk.f32.gmra.mrb[38].mxu1 %vm510_vm2, %v974_v46 }
 0x31c   : > { %1605 = vmatprep.mubr.msk.f32.mxu1 %vm1742_vm0, %v1743_v6 }
 0x31d   : > { %v975_v36 = vmax.f32 %v922_v26, 0.0 }
 0x31e   : > { %v926_v32 = vpop.f32.mrb[4].mxu1 }
 0x31f   : > { %v927_v50 = vadd.f32 %v2196_v1, %v926_v32  ;;  %v1549_v52 = vpop.f32.mrb[5].mxu1  ;;  %1606 = vmatmul.mubr.msk.f32.gmra.mrb[40].mxu1 %vm510_vm2, %v975_v36 }
 0x320   : > { %1608 = vmatprep.mubr.msk.f32.mxu1 %vm1742_vm0, %v1743_v6 }
 0x321   : > { %v976_v38 = vmax.f32 %v927_v50, 0.0 }
 0x322   : > { %v931_v10 = vpop.f32.mrb[6].mxu1 }
 0x323   : > { %v932_v39 = vadd.f32 %v2196_v1, %v931_v10  ;;  %v1552_v27 = vpop.f32.mrb[7].mxu1  ;;  %1609 = vmatmul.mubr.msk.f32.gmra.mrb[42].mxu1 %vm510_vm2, %v976_v38 }
 0x324   : > { %1611 = vmatprep.mubr.msk.f32.mxu1 %vm1742_vm0, %v1743_v6 }
 0x325   : > { %v977_v56 = vmax.f32 %v932_v39, 0.0 }
 0x326   : > { %v936_v58 = vpop.f32.mrb[8].mxu1 }
 0x327   : > { %v937_v47 = vadd.f32 %v2196_v1, %v936_v58  ;;  %v1555_v13 = vpop.f32.mrb[9].mxu1  ;;  %1612 = vmatmul.mubr.msk.f32.gmra.mrb[44].mxu1 %vm510_vm2, %v977_v56 }
 0x328   : > { %1614 = vmatprep.mubr.msk.f32.mxu1 %vm1742_vm0, %v1743_v6 }
 0x329   : > { %v978_v42 = vmax.f32 %v937_v47, 0.0 }
 0x32a   : > { %v941_v53 = vpop.f32.mrb[10].mxu1 }
 0x32b   : > { %v942_v62 = vadd.f32 %v2196_v1, %v941_v53  ;;  %v1558_v0 = vpop.f32.mrb[11].mxu1  ;;  %1615 = vmatmul.mubr.msk.f32.gmra.mrb[46].mxu1 %vm510_vm2, %v978_v42 }
 0x32c   : > { %1617 = vmatprep.mubr.msk.f32.mxu1 %vm1742_vm0, %v1743_v6 }
 0x32d   : > { %v979_v59 = vmax.f32 %v942_v62, 0.0 }
 0x32e   : > { %v946_v19 = vpop.f32.mrb[12].mxu1 }
 0x32f   : > { %v947_v16 = vadd.f32 %v2196_v1, %v946_v19  ;;  %v1561_v5 = vpop.f32.mrb[13].mxu1  ;;  %1618 = vmatmul.mubr.msk.f32.gmra.mrb[48].mxu1 %vm510_vm2, %v979_v59 }
 0x330   : > { %1620 = vmatprep.mubr.msk.f32.mxu1 %vm1742_vm0, %v1743_v6 }
 0x331   : > { %v980_v8 = vmax.f32 %v947_v16, 0.0 }
 0x332   : > { %v951_v9 = vpop.f32.mrb[14].mxu1 }
 0x333   : > { %v952_v48 = vadd.f32 %v2196_v1, %v951_v9  ;;  %v1564_v12 = vpop.f32.mrb[15].mxu1  ;;  %1621 = vmatmul.mubr.msk.f32.gmra.mrb[50].mxu1 %vm510_vm2, %v980_v8 }
 0x334   : > { %1623 = vmatprep.mubr.msk.f32.mxu1 %vm1742_vm0, %v1743_v6 }
 0x335   : > { %v981_v45 = vmax.f32 %v952_v48, 0.0 }
 0x336   : > { %v956_v14 = vpop.f32.mrb[16].mxu1 }
 0x337   : > { %v957_v15 = vadd.f32 %v2196_v1, %v956_v14  ;;  %v1567_v51 = vpop.f32.mrb[17].mxu1  ;;  %1624 = vmatmul.mubr.msk.f32.gmra.mrb[52].mxu1 %vm510_vm2, %v981_v45 }
 0x338   : > { %1626 = vmatprep.mubr.msk.f32.mxu1 %vm1742_vm0, %v1743_v6 }
 0x339   : > { %v982_v18 = vmax.f32 %v957_v15, 0.0 }
 0x33a   : > { %v961_v20 = vpop.f32.mrb[18].mxu1 }
 0x33b   : > { %v962_v41 = vadd.f32 %v2196_v1, %v961_v20  ;;  %v1570_v21 = vpop.f32.mrb[19].mxu1  ;;  %1627 = vmatmul.mubr.msk.f32.gmra.mrb[54].mxu1 %vm510_vm2, %v982_v18 }
 0x33c   : > { %1629 = vmatprep.mubr.msk.f32.mxu1 %vm1742_vm0, %v1743_v6 }
 0x33d   : > { %v983_v54 = vmax.f32 %v962_v41, 0.0 }
 0x33f   : > { %1630 = vmatmul.mubr.msk.f32.gmra.mrb[56].mxu1 %vm510_vm2, %v983_v54 }
 0x3ca   : > { %v1109_v1 = vpop.f32.mrb[20].mxu1 }
 0x3cb   : > { %1203 = vst.msk [vmem:[%s2276_s28] sm:$0xff] %vm292_vm1, %v1109_v1  ;;  %v1577_v44 = vpop.f32.mrb[21].mxu1 }
 0x3ce   : > { %v1114_v23 = vpop.f32.mrb[22].mxu1 }
 0x3cf   : > { %1204 = vst.msk [vmem:[%s2276_s28 + $0x8] sm:$0xff] %vm292_vm1, %v1114_v23  ;;  %v1580_v6 = vpop.f32.mrb[23].mxu1 }
 0x3d2   : > { %v1119_v24 = vpop.f32.mrb[24].mxu1 }
 0x3d3   : > { %1205 = vst.msk [vmem:[%s2276_s28 + $0x10] sm:$0xff] %vm292_vm1, %v1119_v24  ;;  %v1583_v49 = vpop.f32.mrb[25].mxu1 }
 0x3d6   : > { %v1124_v25 = vpop.f32.mrb[26].mxu1 }
 0x3d7   : > { %1206 = vst.msk [vmem:[%s2276_s28 + $0x18] sm:$0xff] %vm292_vm1, %v1124_v25  ;;  %v1586_v57 = vpop.f32.mrb[27].mxu1 }
 0x3da   : > { %v1129_v55 = vpop.f32.mrb[28].mxu1 }
 0x3db   : > { %1207 = vst.msk [vmem:[%s2276_s28 + $0x20] sm:$0xff] %vm292_vm1, %v1129_v55  ;;  %v1589_v28 = vpop.f32.mrb[29].mxu1 }
 0x3de   : > { %v1134_v29 = vpop.f32.mrb[30].mxu1 }
 0x3df   : > { %1208 = vst.msk [vmem:[%s2276_s28 + $0x28] sm:$0xff] %vm292_vm1, %v1134_v29  ;;  %v1592_v61 = vpop.f32.mrb[31].mxu1 }
 0x3e2   : > { %v1139_v31 = vpop.f32.mrb[32].mxu1 }
 0x3e3   : > { %1209 = vst.msk [vmem:[%s2276_s28 + $0x30] sm:$0xff] %vm292_vm1, %v1139_v31  ;;  %v1595_v60 = vpop.f32.mrb[33].mxu1 }
 0x3e6   : > { %v1144_v4 = vpop.f32.mrb[34].mxu1 }
 0x3e7   : > { %1210 = vst.msk [vmem:[%s2276_s28 + $0x38] sm:$0xff] %vm292_vm1, %v1144_v4  ;;  %v1598_v34 = vpop.f32.mrb[35].mxu1 }
 0x3ea   : > { %v1149_v35 = vpop.f32.mrb[36].mxu1 }
 0x3eb   : > { %1211 = vst.msk [vmem:[%s2276_s28 + $0x40] sm:$0xff] %vm292_vm1, %v1149_v35  ;;  %v1601_v11 = vpop.f32.mrb[37].mxu1 }
 0x3ee   : > { %v1154_v37 = vpop.f32.mrb[38].mxu1 }
 0x3ef   : > { %1212 = vst.msk [vmem:[%s2276_s28 + $0x48] sm:$0xff] %vm292_vm1, %v1154_v37  ;;  %v1604_v63 = vpop.f32.mrb[39].mxu1 }
 0x3f2   : > { %v1159_v40 = vpop.f32.mrb[40].mxu1 }
 0x3f3   : > { %1213 = vst.msk [vmem:[%s2276_s28 + $0x50] sm:$0xff] %vm292_vm1, %v1159_v40  ;;  %v1607_v17 = vpop.f32.mrb[41].mxu1 }
 0x3f6   : > { %v1164_v3 = vpop.f32.mrb[42].mxu1 }
 0x3f7   : > { %1214 = vst.msk [vmem:[%s2276_s28 + $0x58] sm:$0xff] %vm292_vm1, %v1164_v3  ;;  %v1610_v43 = vpop.f32.mrb[43].mxu1 }
 0x3fa   : > { %v1169_v2 = vpop.f32.mrb[44].mxu1 }
 0x3fb   : > { %1215 = vst.msk [vmem:[%s2276_s28 + $0x60] sm:$0xff] %vm292_vm1, %v1169_v2  ;;  %v1613_v30 = vpop.f32.mrb[45].mxu1 }
 0x3fe   : > { %v1174_v22 = vpop.f32.mrb[46].mxu1 }
 0x3ff   : > { %1216 = vst.msk [vmem:[%s2276_s28 + $0x68] sm:$0xff] %vm292_vm1, %v1174_v22  ;;  %v1616_v46 = vpop.f32.mrb[47].mxu1 }
 0x402   : > { %v1179_v33 = vpop.f32.mrb[48].mxu1 }
 0x403   : > { %1217 = vst.msk [vmem:[%s2276_s28 + $0x70] sm:$0xff] %vm292_vm1, %v1179_v33  ;;  %v1619_v26 = vpop.f32.mrb[49].mxu1 }
 0x406   : > { %v1184_v7 = vpop.f32.mrb[50].mxu1 }
 0x407   : > { %1218 = vst.msk [vmem:[%s2276_s28 + $0x78] sm:$0xff] %vm292_vm1, %v1184_v7  ;;  %v1622_v36 = vpop.f32.mrb[51].mxu1 }
 0x40a   : > { %v1189_v32 = vpop.f32.mrb[52].mxu1 }
 0x40b   : > { %1219 = vst.msk [vmem:[%s2276_s28 + $0x80] sm:$0xff] %vm292_vm1, %v1189_v32  ;;  %v1625_v50 = vpop.f32.mrb[53].mxu1 }
 0x40e   : > { %v1194_v52 = vpop.f32.mrb[54].mxu1 }
 0x40f   : > { %1220 = vst.msk [vmem:[%s2276_s28 + $0x88] sm:$0xff] %vm292_vm1, %v1194_v52  ;;  %v1628_v38 = vpop.f32.mrb[55].mxu1 }
 0x412   : > { %v1199_v10 = vpop.f32.mrb[56].mxu1 }
 0x413   : > { %1221 = vst.msk [vmem:[%s2276_s28 + $0x90] sm:$0xff] %vm292_vm1, %v1199_v10  ;;  %v1631_v39 = vpop.f32.mrb[57].mxu1 }
 0x414 PF: > { %s17_s21 = sadd.s32 1, %s1739_s21  }
 0x415   : > { %p14_p4 = scmp.ge.s32.totalorder %s17_s21, 4  }
 0x417   :  { %16 = sbr.rel (!%p14_p4) target bundleno = 1 (0x1), region = 82 }

</bundles_post_ra>
